<compile_context>
chip_gen: v7x
topology: tpu7x:2x2x1
jax: 0.10.0
libtpu: 0.0.40
codegen_flags: <defaults>
</compile_context>

<pallas_src>
import functools

import jax
import jax.numpy as jnp
from jax.experimental import pallas as pl
from jax.experimental.pallas import tpu as pltpu

H1 = 128       # hidden 1
H2 = 64        # hidden 2
OUT_PAD = 128  # final layer padded to a full lane width (true out_features = 1)


def _mlp_kernel(x_ref, w1_ref, b1_ref, w2_ref, b2_ref, w3_ref, b3_ref, o_ref,
                *, matmul_dtype):
    # Layer 1: (TB, D) @ (D, 128) -> f32 accum, bias + ReLU in f32
    x = x_ref[...].astype(matmul_dtype)
    h1 = jnp.dot(x, w1_ref[...], preferred_element_type=jnp.float32)
    h1 = jnp.maximum(h1 + b1_ref[...], 0.0)
    # Layer 2: (TB, 128) @ (128, 64)
    h2 = jnp.dot(h1.astype(matmul_dtype), w2_ref[...],
                 preferred_element_type=jnp.float32)
    h2 = jnp.maximum(h2 + b2_ref[...], 0.0)
    # Layer 3 (zero-padded to 128 lanes): (TB, 64) @ (64, 128)
    out = jnp.dot(h2.astype(matmul_dtype), w3_ref[...],
                  preferred_element_type=jnp.float32)
    o_ref[...] = (out + b3_ref[...]).astype(o_ref.dtype)


def simple_regressor_forward(x, params, *, block_b=512,
                             matmul_dtype=jnp.bfloat16):
    """x: (B, D) float32.  params: (in,out) weights, (1,out) biases (f32)."""
    B, D = x.shape

    # Cast matmul operands once, outside the hot loop; biases stay f32.
    w1 = params["w1"].astype(matmul_dtype)
    w2 = params["w2"].astype(matmul_dtype)
    w3 = jnp.pad(params["w3"],
                 ((0, 0), (0, OUT_PAD - params["w3"].shape[1]))
                 ).astype(matmul_dtype)
    b1 = params["b1"].astype(jnp.float32)
    b2 = params["b2"].astype(jnp.float32)
    b3 = jnp.pad(params["b3"],
                 ((0, 0), (0, OUT_PAD - params["b3"].shape[1]))
                 ).astype(jnp.float32)

    # Batch tile: multiple of 8 sublanes, capped at block_b; pad B up to it.
    # TODO(synk): for very large D, additionally tile the K axis of layer 1
    # (grid=(B_tiles, K_tiles), f32 accumulator scratch, K axis "arbitrary").
    tb = min(block_b, max(B, 8))
    tb = (tb + 7) // 8 * 8
    b_pad = pl.cdiv(B, tb) * tb
    if b_pad != B:
        x = jnp.pad(x, ((0, b_pad - B), (0, 0)))

    grid = (b_pad // tb,)
    const = lambda shape: pl.BlockSpec(shape, lambda i: (0, 0))  # resident

    kernel = functools.partial(_mlp_kernel, matmul_dtype=matmul_dtype)

    out = pl.pallas_call(
        kernel,
        out_shape=jax.ShapeDtypeStruct((b_pad, OUT_PAD), jnp.float32),
        grid=grid,
        in_specs=[
            pl.BlockSpec((tb, D), lambda i: (i, 0)),   # pipelined batch tiles
            const(w1.shape), const(b1.shape),
            const(w2.shape), const(b2.shape),
            const(w3.shape), const(b3.shape),
        ],
        out_specs=pl.BlockSpec((tb, OUT_PAD), lambda i: (i, 0)),
        compiler_params=pltpu.CompilerParams(
            dimension_semantics=("parallel",),
        ),
    )(x, w1, b1, w2, b2, w3, b3)

    # Drop batch padding and the zero-padded output columns.
    return out[:B, :1]


def init_params(key, input_dim):
    """Deterministic init mirroring PyTorch's default nn.Linear init
    (uniform in +/- 1/sqrt(fan_in)); weights stored as (in, out)."""
    dims = [(input_dim, H1), (H1, H2), (H2, 1)]
    params = {}
    for i, (fan_in, fan_out) in enumerate(dims, start=1):
        key, kw, kb = jax.random.split(key, 3)
        bound = 1.0 / jnp.sqrt(jnp.float32(fan_in))
        params[f"w{i}"] = jax.random.uniform(
            kw, (fan_in, fan_out), jnp.float32, -bound, bound)
        params[f"b{i}"] = jax.random.uniform(
            kb, (1, fan_out), jnp.float32, -bound, bound)
    return params


def reference_forward(x, params, matmul_dtype=jnp.float32):
    """Pure-JAX reference; matmul_dtype lets us match the kernel's MXU path."""
    def dot(a, b):
        return jnp.dot(a.astype(matmul_dtype), b.astype(matmul_dtype),
                       preferred_element_type=jnp.float32)
    h = jnp.maximum(dot(x, params["w1"]) + params["b1"], 0.0)
    h = jnp.maximum(dot(h, params["w2"]) + params["b2"], 0.0)
    return dot(h, params["w3"]) + params["b3"]


if __name__ == "__main__":
    key = jax.random.PRNGKey(0)
    key, kx = jax.random.split(key)

    batch, input_dim = 16, 32
    x = jax.random.normal(kx, (batch, input_dim), jnp.float32)
    params = init_params(key, input_dim)

    # block_b=8 -> a 2-step batch grid even at this small test size.
    out = simple_regressor_forward(x, params, block_b=8)
    out = jax.block_until_ready(out)
    assert out.shape == (batch, 1)

    # Tight check against a reference using the same bf16-operand MXU path.
    ref_bf16 = reference_forward(x, params, matmul_dtype=jnp.bfloat16)
    assert jnp.allclose(out, ref_bf16, atol=5e-3, rtol=5e-3)

    # Coarse sanity check against the true f32 semantics of the module.
    ref_f32 = reference_forward(x, params, matmul_dtype=jnp.float32)
    assert jnp.allclose(out, ref_f32, atol=1e-1, rtol=1e-1)

    print("KERNEL_OK")
</pallas_src>

<mosaic_0001>
module attributes {stable_mosaic.version = 11 : i64} {
  func.func @_mlp_kernel(%arg0: i32, %arg1: memref<8x32xf32, #tpu.memory_space<vmem>>, %arg2: memref<32x128xbf16, #tpu.memory_space<vmem>>, %arg3: memref<1x128xf32, #tpu.memory_space<vmem>>, %arg4: memref<128x64xbf16, #tpu.memory_space<vmem>>, %arg5: memref<1x64xf32, #tpu.memory_space<vmem>>, %arg6: memref<64x128xbf16, #tpu.memory_space<vmem>>, %arg7: memref<1x128xf32, #tpu.memory_space<vmem>>, %arg8: memref<8x128xf32, #tpu.memory_space<vmem>>) attributes {dimension_semantics = [#tpu.dimension_semantics<parallel>], iteration_bounds = array<i64: 2>, scalar_prefetch = 0 : i64, scratch_operands = 0 : i64, tpu.core_type = #tpu.core_type<tc>, window_params = [{transform_indices = @transform_0, window_bounds = array<i64: 8, 32>}, {pipeline_mode = #tpu.pipeline_mode<synchronous>, transform_indices = @transform_1, window_bounds = array<i64: 32, 128>}, {pipeline_mode = #tpu.pipeline_mode<synchronous>, transform_indices = @transform_2, window_bounds = array<i64: 1, 128>}, {pipeline_mode = #tpu.pipeline_mode<synchronous>, transform_indices = @transform_3, window_bounds = array<i64: 128, 64>}, {pipeline_mode = #tpu.pipeline_mode<synchronous>, transform_indices = @transform_4, window_bounds = array<i64: 1, 64>}, {pipeline_mode = #tpu.pipeline_mode<synchronous>, transform_indices = @transform_5, window_bounds = array<i64: 64, 128>}, {pipeline_mode = #tpu.pipeline_mode<synchronous>, transform_indices = @transform_6, window_bounds = array<i64: 1, 128>}, {transform_indices = @transform_7, window_bounds = array<i64: 8, 128>}]} {
    %c0 = arith.constant 0 : index
    %c0_0 = arith.constant 0 : index
    %0 = vector.load %arg1[%c0, %c0_0] : memref<8x32xf32, #tpu.memory_space<vmem>>, vector<8x32xf32>
    %1 = arith.truncf %0 : vector<8x32xf32> to vector<8x32xbf16>
    %c0_1 = arith.constant 0 : index
    %c0_2 = arith.constant 0 : index
    %2 = vector.load %arg2[%c0_1, %c0_2] : memref<32x128xbf16, #tpu.memory_space<vmem>>, vector<32x128xbf16>
    %cst = arith.constant dense<0.000000e+00> : vector<8x128xf32>
    %3 = tpu.matmul %1, %2, %cst {dimension_numbers = #tpu.dot_dimension_numbers<[1], [0], [0], [1], [0, 0, 1, 1], [], []>} : vector<8x32xbf16>, vector<32x128xbf16>, vector<8x128xf32> -> vector<8x128xf32>
    %c0_3 = arith.constant 0 : index
    %c0_4 = arith.constant 0 : index
    %4 = vector.load %arg3[%c0_3, %c0_4] : memref<1x128xf32, #tpu.memory_space<vmem>>, vector<1x128xf32>
    %5 = vector.broadcast %4 : vector<1x128xf32> to vector<8x128xf32>
    %6 = arith.addf %3, %5 : vector<8x128xf32>
    %cst_5 = arith.constant 0.000000e+00 : f32
    %7 = vector.broadcast %cst_5 : f32 to vector<8x128xf32>
    %8 = arith.maximumf %6, %7 : vector<8x128xf32>
    %9 = arith.truncf %8 : vector<8x128xf32> to vector<8x128xbf16>
    %c0_6 = arith.constant 0 : index
    %c0_7 = arith.constant 0 : index
    %10 = vector.load %arg4[%c0_6, %c0_7] : memref<128x64xbf16, #tpu.memory_space<vmem>>, vector<128x64xbf16>
    %cst_8 = arith.constant dense<0.000000e+00> : vector<8x64xf32>
    %11 = tpu.matmul %9, %10, %cst_8 {dimension_numbers = #tpu.dot_dimension_numbers<[1], [0], [0], [1], [0, 0, 1, 1], [], []>} : vector<8x128xbf16>, vector<128x64xbf16>, vector<8x64xf32> -> vector<8x64xf32>
    %c0_9 = arith.constant 0 : index
    %c0_10 = arith.constant 0 : index
    %12 = vector.load %arg5[%c0_9, %c0_10] : memref<1x64xf32, #tpu.memory_space<vmem>>, vector<1x64xf32>
    %13 = vector.broadcast %12 : vector<1x64xf32> to vector<8x64xf32>
    %14 = arith.addf %11, %13 : vector<8x64xf32>
    %cst_11 = arith.constant 0.000000e+00 : f32
    %15 = vector.broadcast %cst_11 : f32 to vector<8x64xf32>
    %16 = arith.maximumf %14, %15 : vector<8x64xf32>
    %17 = arith.truncf %16 : vector<8x64xf32> to vector<8x64xbf16>
    %c0_12 = arith.constant 0 : index
    %c0_13 = arith.constant 0 : index
    %18 = vector.load %arg6[%c0_12, %c0_13] : memref<64x128xbf16, #tpu.memory_space<vmem>>, vector<64x128xbf16>
    %cst_14 = arith.constant dense<0.000000e+00> : vector<8x128xf32>
    %19 = tpu.matmul %17, %18, %cst_14 {dimension_numbers = #tpu.dot_dimension_numbers<[1], [0], [0], [1], [0, 0, 1, 1], [], []>} : vector<8x64xbf16>, vector<64x128xbf16>, vector<8x128xf32> -> vector<8x128xf32>
    %c0_15 = arith.constant 0 : index
    %c0_16 = arith.constant 0 : index
    %20 = vector.load %arg7[%c0_15, %c0_16] : memref<1x128xf32, #tpu.memory_space<vmem>>, vector<1x128xf32>
    %21 = vector.broadcast %20 : vector<1x128xf32> to vector<8x128xf32>
    %22 = arith.addf %19, %21 : vector<8x128xf32>
    %c0_17 = arith.constant 0 : index
    %c0_18 = arith.constant 0 : index
    %23 = vector.load %arg8[%c0_17, %c0_18] : memref<8x128xf32, #tpu.memory_space<vmem>>, vector<8x128xf32>
    tpu.vector_store %arg8[%c0_17, %c0_18], %22 {strides = array<i32>} : memref<8x128xf32, #tpu.memory_space<vmem>>, vector<8x128xf32>,
    return
  }
  func.func @transform_0(%arg0: i32) -> (i32, i32) {
    %c0_i32 = arith.constant 0 : i32
    %c0_i32_0 = arith.constant 0 : i32
    return %arg0, %c0_i32 : i32, i32
  }
  func.func @transform_1(%arg0: i32) -> (i32, i32) {
    %c0_i32 = arith.constant 0 : i32
    %c0_i32_0 = arith.constant 0 : i32
    %c0_i32_1 = arith.constant 0 : i32
    return %c0_i32, %c0_i32_0 : i32, i32
  }
  func.func @transform_2(%arg0: i32) -> (i32, i32) {
    %c0_i32 = arith.constant 0 : i32
    %c0_i32_0 = arith.constant 0 : i32
    %c0_i32_1 = arith.constant 0 : i32
    return %c0_i32, %c0_i32_0 : i32, i32
  }
  func.func @transform_3(%arg0: i32) -> (i32, i32) {
    %c0_i32 = arith.constant 0 : i32
    %c0_i32_0 = arith.constant 0 : i32
    %c0_i32_1 = arith.constant 0 : i32
    return %c0_i32, %c0_i32_0 : i32, i32
  }
  func.func @transform_4(%arg0: i32) -> (i32, i32) {
    %c0_i32 = arith.constant 0 : i32
    %c0_i32_0 = arith.constant 0 : i32
    %c0_i32_1 = arith.constant 0 : i32
    return %c0_i32, %c0_i32_0 : i32, i32
  }
  func.func @transform_5(%arg0: i32) -> (i32, i32) {
    %c0_i32 = arith.constant 0 : i32
    %c0_i32_0 = arith.constant 0 : i32
    %c0_i32_1 = arith.constant 0 : i32
    return %c0_i32, %c0_i32_0 : i32, i32
  }
  func.func @transform_6(%arg0: i32) -> (i32, i32) {
    %c0_i32 = arith.constant 0 : i32
    %c0_i32_0 = arith.constant 0 : i32
    %c0_i32_1 = arith.constant 0 : i32
    return %c0_i32, %c0_i32_0 : i32, i32
  }
  func.func @transform_7(%arg0: i32) -> (i32, i32) {
    %c0_i32 = arith.constant 0 : i32
    %c0_i32_0 = arith.constant 0 : i32
    return %arg0, %c0_i32 : i32, i32
  }
}

</mosaic_0001>

<bundles_post_ra>
// kernel: tpu_custom_call.1
= control target key start
LH: loop header
LB: loop body
LE: loop exit
PB: predicated region body
PF: predicated region fallthrough
CT: control target
= control target key end

     0   :  { %12 = vsyncpa [#allocation3], 0  ;;  %s1018_s0 = inlined_call_operand.vmem [shape: f32[16,32], index: 0, kind: input, shape index: {}]   ;;  %s1019_s1 = inlined_call_operand.vmem [shape: bf16[32,128], index: 1, kind: input, shape index: {}]   ;;  %s1020_s2 = inlined_call_operand.vmem [shape: f32[1,128], index: 2, kind: input, shape index: {}]   ;;  %s1021_s3 = inlined_call_operand.vmem [shape: bf16[128,64], index: 3, kind: input, shape index: {}]   ;;  %s1022_s4 = inlined_call_operand.vmem [shape: f32[1,64], index: 4, kind: input, shape index: {}]   ;;  %s1023_s5 = inlined_call_operand.vmem [shape: bf16[64,128], index: 5, kind: input, shape index: {}]   ;;  %s1024_s6 = inlined_call_operand.vmem [shape: f32[1,128], index: 6, kind: input, shape index: {}]   ;;  %s1025_s7 = inlined_call_operand.hbm [shape: f32[16,128], index: 7, kind: output, shape index: {}]  }
   0x1   :  { %14 = vsyncpa [#allocation3 + $0x1], 0  ;;  %s864_s24 = smov 0   ;;  %s866_s25 = smov 0  }
   0x2   :  { %s868_s26 = smov 0   ;;  %s870_s27 = smov 0  }
   0x3 LB: > { %s885_s28 = sadd.s32 4294967295, %s819_s27   ;;  %s616_s29 = sadd.s32 4294967294, %s819_s27   ;;  %s819_s27 = sphi %s870_s27, %s1031_s27   ;;  %s815_s26 = sphi %s868_s26, %s1030_s26   ;;  %s811_s25 = sphi %s866_s25, %s1029_s25   ;;  %s807_s24 = sphi %s864_s24, %s1028_s24  }
   0x4   : > { %s889_s30 = sadd.s32 1, %s819_s27   ;;  %s179_s8 = sadd.s32 1, %s815_s26 }
   0x5   : > { %s176_s9 = ssub.s32 %s819_s27, %s889_s30  ;;  %p189_p0 = scmp.ne.s32.totalorder %s815_s26, %s811_s25 }
   0x6   : > { %p177_p1 = scmp.eq.s32.totalorder %s176_s9, 0  ;;  %p190_p2 = scmp.eq.s32.totalorder %s885_s28, 1 }
   0x7   : > { %p195_p3 = scmp.ne.s32.totalorder %s811_s25, %s807_s24  ;;  %p196_p4 = scmp.eq.s32.totalorder %s616_s29, 1 }
   0x8   : > { %s900_s10 = scalar_select %p177_p1, %s815_s26, %s179_s8  }
   0x9   : > { %p902_p5 = por %p190_p2, %p189_p0  ;;  %p906_p6 = por %p196_p4, %p195_p3 }
   0xa   : > { %p619_p7 = scmp.ge.s32.totalorder %s819_s27, 1  ;;  %p239_p8 = scmp.lt.s32.totalorder %s819_s27, 3 }
   0xc   : > { %p240_p9 = pnand %p619_p7, %p239_p8 }
   0xd   : > { %v743_v0 = vld [vmem:[%s1019_s1] sm:$0xff] (!%p240_p9)   ;;  %v821_v1 = vmov (!%p240_p9), 0.0   ;;  %v744_v2 = vld [vmem:[%s1019_s1 + $0x8] sm:$0xff] (!%p240_p9)   ;;  %vm822_vm0 = vmmov (!%p240_p9), 0   ;;  %p270_p10 = scmp.lt.s32.totalorder (!%p240_p9), %s885_s28, 1  ;;  %vm300_vm1 = vcmask (!%p240_p9), 261120  }
   0xe   : > { %243 = sbr.rel (%p240_p9) target bundleno = 692 (0x2b4), region = 48  ;;  %662 = vmatprep.subr.bf16.mxu0 (!%p240_p9), %v821_v1  ;;  %670 = vmatprep.subr.bf16.mxu1 (!%p240_p9), %v821_v1  ;;  %v745_v3 = vld [vmem:[%s1021_s3] sm:$0xff] (!%p240_p9)   ;;  %v746_v4 = vld [vmem:[%s1021_s3 + $0x8] sm:$0xff] (!%p240_p9)   ;;  %v747_v6 = vld [vmem:[%s1021_s3 + $0x10] sm:$0xff] (!%p240_p9)   ;;  %vm498_vm2 = vcmask (!%p240_p9), 523264   ;;  %s642_s9 = sshll.u32 (!%p240_p9), %s885_s28, 7 }
   0xf   : > { %663 = vmatpush3.bf16.msra.mxu0 (!%p240_p9), %v743_v0  ;;  %666 = vmatprep.mubr.msk.bf16.mxu0 (!%p240_p9), %vm822_vm0, %v821_v1  ;;  %v748_v8 = vld [vmem:[%s1021_s3 + $0x18] sm:$0xff] (!%p240_p9)   ;;  %v749_v9 = vld [vmem:[%s1021_s3 + $0x20] sm:$0xff] (!%p240_p9)   ;;  %v750_v10 = vld [vmem:[%s1021_s3 + $0x28] sm:$0xff] (!%p240_p9)   ;;  %s976_s17 = scalar_lea.hbm (!%p240_p9), %s1025_s7, %s642_s9 }
  0x10   : > { %664 = vmatprep.subr.bf16.mxu0 (!%p240_p9), %v821_v1  ;;  %686 = vmatprep.mubr.msk.bf16.mxu1 (!%p240_p9), %vm822_vm0, %v821_v1  ;;  %v751_v11 = vld [vmem:[%s1021_s3 + $0x30] sm:$0xff] (!%p240_p9)   ;;  %v752_v12 = vld [vmem:[%s1021_s3 + $0x38] sm:$0xff] (!%p240_p9)   ;;  %v753_v13 = vld [vmem:[%s1023_s5] sm:$0xff] (!%p240_p9)  }
  0x11   : > { %671 = vmatpush3.bf16.msra.mxu1 (!%p240_p9), %v745_v3  ;;  %v754_v14 = vld [vmem:[%s1023_s5 + $0x8] sm:$0xff] (!%p240_p9)   ;;  %v622_v15 = vld [vmem:[%s1020_s2] ss:$0 sm:$0xff] (!%p240_p9)  ;;  %v755_v23 = vld [vmem:[%s1023_s5 + $0x10] sm:$0xff] (!%p240_p9)  }
  0x12   : > { %672 = vmatprep.subr.bf16.mxu1 (!%p240_p9), %v821_v1  ;;  %v756_v24 = vld [vmem:[%s1023_s5 + $0x18] sm:$0xff] (!%p240_p9)   ;;  %v626_v25 = vld [vmem:[%s1022_s4] ss:$0 sm:$0xff] (!%p240_p9) }
  0x13   : > { %665 = vmatpush3.bf16.msra.mxu0 (!%p240_p9), %v744_v2  ;;  %v635_v33 = vld [vmem:[%s1024_s6] ss:$0 sm:$0xff] (!%p240_p9) }
  0x14   : > { %690 = vmatprep.subr.bf16.mxu0 (!%p240_p9), %v821_v1 }
  0x15   : > { %s271_s19 = scalar_select %p270_p10, %s885_s28, 1  ;;  %673 = vmatpush3.bf16.msra.mxu1 %v746_v4 }
  0x16   : > { %674 = vmatprep.subr.bf16.mxu1 %v821_v1 }
  0x17   : > { %s621_s22 = sshll.u32 %s271_s19, 3  ;;  %s823_s19 = smov [#allocation2]  }
  0x18   : > { %s273_s8 = scalar_lea.vmem %s1018_s0, %s621_s22  ;;  %s267_s22 = sand.u32 1, %s811_s25  }
  0x19   : > { %v275_v5 = vld [vmem:[%s273_s8] sm:$0xff]  ;;  %675 = vmatpush3.bf16.msra.mxu1 %v747_v6  ;;  %s620_s23 = sshll.u32 %s267_s22, 3  ;;  %s544_s18 = scalar_lea.sflag [#allocation3], %s267_s22 }
  0x1a   : > { %v276_v7 = vpack.c.bf16 %v275_v5, %v275_v5  ;;  %676 = vmatprep.subr.bf16.mxu1 %v821_v1  ;;  %s269_s13 = scalar_lea.vmem [#allocation2], %s620_s23  ;;  %s761_s20 = sshll.u32 %s823_s19, 4  ;;  %s762_s20 = int_to_ptr.vmem [resolvable:$false] %s761_s20 }
  0x1b   : > { %s557_s14 = sshll.u32 %s269_s13, 4  ;;  %s763_s21 = scalar_lea.vmem %s762_s20, 256  ;;  %s978_s14 = int_to_ptr.vmem [resolvable:$true] %s557_s14 }
  0x1c   : > { %667 = vmatmul.mubr.msk.bf16.vlgmr.msra.gmra.mrb[0].mxu0 %vm300_vm1, %v276_v7  ;;  %s757_s28 = scalar_lea.vmem %s978_s14, 128  ;;  %p764_p0 = scmp.lt.s32.totalorder %s978_s14, %s762_s20 }
  0x1d   : > { %698 = vmatprep.mubr.msk.bf16.mxu0 %vm822_vm0, %v821_v1  ;;  %677 = vmatpush3.bf16.msra.mxu1 %v748_v8  ;;  %p758_p11 = scmp.ne.s32.totalorder %s978_s14, %s757_s28  ;;  %p765_p1 = scmp.lt.s32.totalorder %s763_s21, %s757_s28 }
  0x1e   : > { %678 = vmatprep.subr.bf16.mxu1 %v821_v1  ;;  %691 = vmatpush3.bf16.msra.mxu0 %v753_v13 }
  0x1f   : > { %692 = vmatprep.subr.bf16.mxu0 %v821_v1  ;;  %p759_p12 = pnand %p758_p11, %p902_p5  ;;  %p766_p2 = por %p765_p1, %p764_p0 }
  0x21   : > { %679 = vmatpush3.bf16.msra.mxu1 %v749_v9  ;;  %p760_p13 = pneg %p759_p12 }
  0x22   : > { %680 = vmatprep.subr.bf16.mxu1 %v821_v1  ;;  %693 = vmatpush3.bf16.msra.mxu0 %v754_v14 }
  0x23   : > { %694 = vmatprep.subr.bf16.mxu0 %v821_v1  ;;  %p767_p3 = pnand %p766_p2, %p760_p13 }
  0x25   : > { %681 = vmatpush3.bf16.msra.mxu1 %v750_v10 }
  0x26   : > { %682 = vmatprep.subr.bf16.mxu1 %v821_v1  ;;  %695 = vmatpush3.bf16.msra.mxu0 %v755_v23 }
  0x27   : > { %696 = vmatprep.subr.bf16.mxu0 %v821_v1 }
  0x29   : > { %683 = vmatpush3.bf16.msra.mxu1 %v751_v11 }
  0x2a   : > { %684 = vmatprep.subr.bf16.mxu1 %v821_v1  ;;  %697 = vmatpush3.bf16.msra.mxu0 %v756_v24 }
  0x2d   : > { %685 = vmatpush3.bf16.msra.mxu1 %v752_v12 }
  0xef   : > { %v338_v16 = vpop.f32.mrb[0].mxu0 }
  0xf0   : > { %v339_v17 = vadd.f32 %v622_v15, %v338_v16  ;;  %v668_v18 = vpop.f32.mrb[1].mxu0 }
  0xf1   : > { %v341_v19 = vpop.f32.mrb[2].mxu0 }
  0xf2   : > { %v344_v20 = vmax.f32 %v339_v17, 0.0  ;;  %v669_v21 = vpop.f32.mrb[3].mxu0 }
  0xf4   : > { %v345_v22 = vpack.c.bf16 %v344_v20, %v344_v20 }
  0xf6   : > { %687 = vmatmul.mubr.bf16.vlgmr.msra.gmra.mrb[0].mxu1 %v345_v22 }
 0x1c9   : > { %v451_v26 = vpop.f32.mrb[0].mxu1 }
 0x1ca   : > { %v452_v27 = vadd.f32 %v626_v25, %v451_v26  ;;  %v688_v28 = vpop.f32.mrb[1].mxu1 }
 0x1cb   : > { %v454_v29 = vpop.f32.mrb[2].mxu1 }
 0x1cc   : > { %v457_v30 = vmax.f32 %v452_v27, 0.0  ;;  %v689_v31 = vpop.f32.mrb[3].mxu1 }
 0x1ce   : > { %v458_v32 = vpack.c.bf16 %v457_v30, %v457_v30 }
 0x1d0   : > { %699 = vmatmul.mubr.msk.bf16.vlgmr.msra.gmra.mrb[4].mxu0 %vm498_vm2, %v458_v32 }
 0x2a3   : > { %v536_v34 = vpop.f32.mrb[4].mxu0 }
 0x2a4   : > { %v537_v35 = vadd.f32 %v635_v33, %v536_v34  ;;  %v700_v36 = vpop.f32.mrb[5].mxu0 }
 0x2a5   : > { %v539_v37 = vpop.f32.mrb[6].mxu0 }
 0x2a6   : > { %542 = vst [vmem:[%s269_s13] sm:$0xff] %v537_v35  ;;  %v701_v38 = vpop.f32.mrb[7].mxu0 }
 0x2a7   : > { %770 = shalt.err (!%p767_p3)
}
 0x2a8   : > { %s771_s22 = scalar_lea.hbm %s976_s17, 128  ;;  %s775_s8 = scalar_lea.hbm %s1025_s7, 256 }
 0x2a9   : > { %p772_p4 = scmp.ne.s32.totalorder %s976_s17, %s771_s22  ;;  %p776_p9 = scmp.lt.u32.totalorder %s976_s17, %s1025_s7 }
 0x2aa   : > { %p777_p10 = scmp.lt.u32.totalorder %s775_s8, %s771_s22  ;;  %p779_p12 = scmp.lt.u32.totalorder %s771_s22, %s976_s17 }
 0x2ab   : > { %p773_p7 = pnand %p772_p4, %p902_p5 }
 0x2ac   : > { %p778_p11 = por %p777_p10, %p776_p9 }
 0x2ad   : > { %p774_p8 = pneg %p773_p7 }
 0x2ae   : > { %p780_p13 = por %p779_p12, %p778_p11 }
 0x2b0   : > { %p781_p0 = pnand %p780_p13, %p774_p8 }
 0x2b2   : > { %784 = shalt.err (!%p781_p0)
}
 0x2b3   : > { %702 = dma.vmem_to_hbm [thread:$0]  (%p902_p5), %s978_s14, 128, %s976_s17, %s544_s18  }
 0x2b4 PF: > { %p708_p1 = scmp.ge.s32.totalorder %s819_s27, 2  ;;  %s569_s15 = sand.u32 1, %s807_s24  }
 0x2b5   : > { %s570_s16 = scalar_lea.sflag [#allocation3], %s569_s15 }
 0x2b6   : > { %p705_p2 = pnand %p708_p1, %p906_p6 }
 0x2b8   : > { %802 = dma.done.wait (!%p705_p2), %s570_s16, 128  }
 0x2b9   : > { %804 = vsyncadd (!%p705_p2), %s570_s16, 4294967168  ;;  %p17_p3 = scmp.ge.s32.totalorder %s889_s30, 4   ;;  %s1028_s24 = smov %s811_s25 }
 0x2ba   : > { %s1029_s25 = smov %s815_s26  ;;  %s1030_s26 = smov %s900_s10 }
 0x2bb   : > { %s1031_s27 = smov %s889_s30  ;;  %19 = sbr.rel (!%p17_p3) target bundleno = 3 (0x3), region = 83 }
 0x2c2   :  { %575 = vsyncpa [#allocation3], 1 }
 0x2c3   :  { %577 = vsyncpa [#allocation3 + $0x1], 1 }

</bundles_post_ra>
